<compile_context>
chip_gen: v5e
topology: v5e:2x2
jax: 0.10.0
libtpu: 0.0.40
codegen_flags: <defaults>
</compile_context>

<pallas_src>
import functools

import jax
import jax.numpy as jnp
from jax.experimental import pallas as pl
from jax.experimental.pallas import tpu as pltpu

_LANE = 128


def _round_up(x, m):
    return (x + m - 1) // m * m


def _vmem_capacity_bytes():
    try:
        info = pltpu.get_tpu_info()
        cap = getattr(info, "vmem_capacity_bytes", None)
        if cap:
            return int(cap)
    except Exception:
        pass
    return 64 << 20  # conservative fallback (v7x-sized VMEM)


def _choose_tiles(B, C, HW, itemsize, vmem_cap):
    """Pick (TB, HW_TILE, nbuf).

    TB is either == B (full-dim block, always legal) or a multiple of 8 (the
    second-minor constraint on the (TB, C) output block).  HW_TILE is either
    == HW (full dim) or a multiple of 128.  nbuf is the requested pipeline
    depth for the x input (3 when spatially tiled, else the default 2).
    """
    # Generation-aware x-tile budget (incl. buffering): ~32 MiB on 128 MiB-VMEM
    # parts (v5e/v6e), ~16 MiB on v7x (64 MiB VMEM).
    budget = max(4 << 20, min(48 << 20, vmem_cap // 4))

    min_hw = HW if HW <= _LANE else _LANE            # smallest legal spatial tile
    row_bytes = C * min_hw * itemsize                # one batch row at minimal tile

    # 1) Batch tile: shrink TB first so even the minimal spatial tile fits the
    #    budget (wide-C safety); for big batches leave >= 2 batch blocks so the
    #    megacore / v7x's second TensorCore gets work.
    tb_fit = max(1, budget // (2 * row_bytes))
    if B <= tb_fit:
        TB = B
        if B >= 16:
            TB = max(8, ((B // 2) // 8) * 8)
    else:
        TB = max(8, (min(tb_fit, B) // 8) * 8)

    # 2) Spatial tile.
    hw_padded = _round_up(HW, _LANE)
    if HW <= _LANE or 2 * TB * C * hw_padded * itemsize <= budget:
        HW_TILE, nbuf = HW, 2                        # whole spatial extent resident
    else:
        nbuf = 3                                     # strided spatial DMA -> deeper pipeline
        max_hw = budget // (nbuf * TB * C * itemsize)
        HW_TILE = max(_LANE, (max_hw // _LANE) * _LANE)
        HW_TILE = min(HW_TILE, hw_padded)
    return TB, HW_TILE, nbuf


def _se_kernel(x_ref, w1t_ref, b1_ref, w2t_ref, b2_ref, o_ref, acc_ref, *,
               inv_hw, tail):
    # x_ref:   (TB, C, HW_TILE)  batch-tile x spatial-tile slab
    # w1t_ref: (C, Cmid)   b1_ref: (1, Cmid)
    # w2t_ref: (Cmid, C)   b2_ref: (1, C)
    # o_ref:   (TB, C)     acc_ref: (TB, C) f32 partial pool sums
    hw = pl.program_id(1)
    last = pl.num_programs(1) - 1

    @pl.when(hw == 0)
    def _():
        acc_ref[...] = jnp.zeros_like(acc_ref)

    @pl.when(hw < last)
    def _():
        # Steady state: fused upcast + lane reduction, no masking.
        acc_ref[...] += jnp.sum(x_ref[...], axis=-1, dtype=jnp.float32)

    @pl.when(hw == last)
    def _():
        x = x_ref[...]
        if tail:  # static flag: ragged spatial tail -> zero out-of-range lanes
            lane_ids = jax.lax.broadcasted_iota(jnp.int32, x.shape, x.ndim - 1)
            x = jnp.where(lane_ids < tail, x, jnp.zeros_like(x))
        acc_ref[...] += jnp.sum(x, axis=-1, dtype=jnp.float32)

        pooled = acc_ref[...] * inv_hw                                   # global avg pool
        h = jnp.dot(pooled, w1t_ref[...],
                    preferred_element_type=jnp.float32) + b1_ref[...]    # fc1 (1x1 conv)
        h = jnp.maximum(h, 0.0)                                          # relu
        o = jnp.dot(h, w2t_ref[...],
                    preferred_element_type=jnp.float32) + b2_ref[...]    # fc2 (1x1 conv)
        o_ref[...] = o.astype(o_ref.dtype)


def _x_block_spec(TB, C, HW_TILE, nbuf):
    index_map = lambda b, h: (b, 0, h)
    if nbuf > 2 and hasattr(pl, "Buffered"):
        try:
            return pl.BlockSpec((TB, C, HW_TILE), index_map,
                                pipeline_mode=pl.Buffered(nbuf))
        except TypeError:
            pass  # older jax without pipeline_mode: fall back to default depth
    return pl.BlockSpec((TB, C, HW_TILE), index_map)


def se_net_forward(x, w1, b1, w2, b2):
    """x: (B, C, H, W) NCHW.  w1: (Cmid, C), b1: (Cmid,), w2: (C, Cmid), b2: (C,).
    Returns (B, C, 1, 1), matching SE_net.forward."""
    B, C, H, W = x.shape
    Cmid = w1.shape[0]
    HW = H * W
    itemsize = jnp.dtype(x.dtype).itemsize

    vmem_cap = _vmem_capacity_bytes()
    TB, HW_TILE, nbuf = _choose_tiles(B, C, HW, itemsize, vmem_cap)
    nb = pl.cdiv(B, TB)
    nhw = pl.cdiv(HW, HW_TILE)
    rem = HW % HW_TILE                  # valid lanes of the last spatial block (0 => full)
    B_out = nb * TB                     # only the tiny (B_out, C) output is over-allocated

    # TODO(synk): for nb == 1 (tiny batch) the HW reduction is not split across
    # v7x's two TensorCores; doing so needs per-core partial sums + an epilogue.

    x_flat = x.reshape(B, C, HW)        # free reshape of a contiguous array, no HBM copy
    w1t = jnp.transpose(w1)             # (C, Cmid)  row-major matmul operand
    w2t = jnp.transpose(w2)             # (Cmid, C)
    b1_2d = b1.reshape(1, Cmid)
    b2_2d = b2.reshape(1, C)

    kernel = functools.partial(_se_kernel, inv_hw=1.0 / float(HW), tail=int(rem))

    # VMEM budget: x pipeline buffers + resident weights + accumulator/output.
    est_vmem = (nbuf * TB * C * _round_up(HW_TILE, _LANE) * itemsize
                + 4 * (2 * C * Cmid + C + Cmid) * 4
                + 4 * TB * max(C, _LANE) * 4)
    vmem_limit = int(min(vmem_cap - (2 << 20),
                         max((vmem_cap * 3) // 4, est_vmem + (8 << 20))))

    cost = pl.CostEstimate(
        flops=int(B * C * HW + 4 * B * C * Cmid),
        transcendentals=0,
        bytes_accessed=int(B * C * HW * itemsize + B_out * C * itemsize
                           + (2 * C * Cmid + C + Cmid) * 4),
    )

    out = pl.pallas_call(
        kernel,
        out_shape=jax.ShapeDtypeStruct((B_out, C), x.dtype),
        grid_spec=pltpu.PrefetchScalarGridSpec(
            num_scalar_prefetch=0,
            grid=(nb, nhw),                                      # reduction axis last
            in_specs=[
                _x_block_spec(TB, C, HW_TILE, nbuf),             # x slab
                pl.BlockSpec((C, Cmid), lambda b, h: (0, 0)),    # fc1 weight^T (resident)
                pl.BlockSpec((1, Cmid), lambda b, h: (0, 0)),    # fc1 bias
                pl.BlockSpec((Cmid, C), lambda b, h: (0, 0)),    # fc2 weight^T (resident)
                pl.BlockSpec((1, C), lambda b, h: (0, 0)),       # fc2 bias
            ],
            out_specs=pl.BlockSpec((TB, C), lambda b, h: (b, 0)),
            scratch_shapes=[pltpu.VMEM((TB, C), jnp.float32)],   # pooled-sum accumulator
        ),
        compiler_params=pltpu.CompilerParams(
            dimension_semantics=("parallel", "arbitrary"),
            vmem_limit_bytes=vmem_limit,
        ),
        cost_estimate=cost,
    )(x_flat, w1t, b1_2d, w2t, b2_2d)

    return out[:B].reshape(B, C, 1, 1)


def _reference(x, w1, b1, w2, b2):
    # Pure-JAX reference of the PyTorch forward.
    pooled = jnp.mean(x, axis=(2, 3))                       # (B, C)
    h = jnp.maximum(pooled @ w1.T + b1, 0.0)                # (B, Cmid)
    o = h @ w2.T + b2                                       # (B, C)
    return o[:, :, None, None]


if __name__ == "__main__":
    # Small shapes consistent with the module: in_channels=32, reduction=16 -> Cmid=2.
    B, C, H, W = 2, 32, 16, 16
    reduction = 16
    Cmid = C // reduction

    key = jax.random.PRNGKey(0)
    kx, k1, k2, k3, k4 = jax.random.split(key, 5)

    x = jax.random.normal(kx, (B, C, H, W), dtype=jnp.float32)
    # Deterministic synthetic params (shapes from nn.Conv2d(C, Cmid, 1) / (Cmid, C, 1)).
    w1 = jax.random.normal(k1, (Cmid, C), dtype=jnp.float32) * 0.1   # fc1.weight squeezed
    b1 = jax.random.normal(k2, (Cmid,), dtype=jnp.float32) * 0.1     # fc1.bias
    w2 = jax.random.normal(k3, (C, Cmid), dtype=jnp.float32) * 0.1   # fc2.weight squeezed
    b2 = jax.random.normal(k4, (C,), dtype=jnp.float32) * 0.1        # fc2.bias

    out = se_net_forward(x, w1, b1, w2, b2)
    out = jax.block_until_ready(out)

    ref = _reference(x, w1, b1, w2, b2)
    assert out.shape == (B, C, 1, 1), out.shape
    assert jnp.allclose(out, ref, atol=1e-5, rtol=1e-5), "mismatch vs reference"

    print("KERNEL_OK")
</pallas_src>

<mosaic_0001>
module attributes {stable_mosaic.version = 11 : i64} {
  func.func @_se_kernel(%arg0: i32, %arg1: i32, %arg2: memref<2x32x256xf32, #tpu.memory_space<vmem>>, %arg3: memref<32x2xf32, #tpu.memory_space<vmem>>, %arg4: memref<1x2xf32, #tpu.memory_space<vmem>>, %arg5: memref<2x32xf32, #tpu.memory_space<vmem>>, %arg6: memref<1x32xf32, #tpu.memory_space<vmem>>, %arg7: memref<2x32xf32, #tpu.memory_space<vmem>>, %arg8: memref<2x32xf32, #tpu.memory_space<vmem>>) attributes {dimension_semantics = [#tpu.dimension_semantics<parallel>, #tpu.dimension_semantics<arbitrary>], iteration_bounds = array<i64: 1, 1>, scalar_prefetch = 0 : i64, scratch_operands = 1 : i64, tpu.core_type = #tpu.core_type<tc>, window_params = [{transform_indices = @transform_0, window_bounds = array<i64: 2, 32, 256>}, {pipeline_mode = #tpu.pipeline_mode<synchronous>, transform_indices = @transform_1, window_bounds = array<i64: 32, 2>}, {pipeline_mode = #tpu.pipeline_mode<synchronous>, transform_indices = @transform_2, window_bounds = array<i64: 1, 2>}, {pipeline_mode = #tpu.pipeline_mode<synchronous>, transform_indices = @transform_3, window_bounds = array<i64: 2, 32>}, {pipeline_mode = #tpu.pipeline_mode<synchronous>, transform_indices = @transform_4, window_bounds = array<i64: 1, 32>}, {transform_indices = @transform_5, window_bounds = array<i64: 2, 32>}]} {
    %c0_i32 = arith.constant 0 : i32
    %0 = arith.cmpi eq, %arg1, %c0_i32 : i32
    %1 = arith.extui %0 : i1 to i32
    %c0_i32_0 = arith.constant 0 : i32
    %2 = arith.cmpi ne, %1, %c0_i32_0 : i32
    scf.if %2 {
      %cst = arith.constant 0.000000e+00 : f32
      %9 = vector.broadcast %cst : f32 to vector<2x32xf32>
      %c0 = arith.constant 0 : index
      %c0_5 = arith.constant 0 : index
      %10 = vector.load %arg8[%c0, %c0_5] : memref<2x32xf32, #tpu.memory_space<vmem>>, vector<2x32xf32>
      tpu.vector_store %arg8[%c0, %c0_5], %9 {strides = array<i32>} : memref<2x32xf32, #tpu.memory_space<vmem>>, vector<2x32xf32>,
    } else {
    }
    %c0_i32_1 = arith.constant 0 : i32
    %3 = arith.cmpi slt, %arg1, %c0_i32_1 : i32
    %4 = arith.extui %3 : i1 to i32
    %c0_i32_2 = arith.constant 0 : i32
    %5 = arith.cmpi ne, %4, %c0_i32_2 : i32
    scf.if %5 {
      %c0 = arith.constant 0 : index
      %c0_5 = arith.constant 0 : index
      %9 = vector.load %arg8[%c0, %c0_5] : memref<2x32xf32, #tpu.memory_space<vmem>>, vector<2x32xf32>
      %c0_6 = arith.constant 0 : index
      %c0_7 = arith.constant 0 : index
      %c0_8 = arith.constant 0 : index
      %10 = vector.load %arg2[%c0_6, %c0_7, %c0_8] : memref<2x32x256xf32, #tpu.memory_space<vmem>>, vector<2x32x256xf32>
      %cst = arith.constant dense<0.000000e+00> : vector<2x32xf32>
      %11 = vector.multi_reduction <add>, %10, %cst [2] : vector<2x32x256xf32> to vector<2x32xf32>
      %12 = arith.addf %9, %11 : vector<2x32xf32>
      %c0_9 = arith.constant 0 : index
      %c0_10 = arith.constant 0 : index
      %13 = vector.load %arg8[%c0_9, %c0_10] : memref<2x32xf32, #tpu.memory_space<vmem>>, vector<2x32xf32>
      tpu.vector_store %arg8[%c0_9, %c0_10], %12 {strides = array<i32>} : memref<2x32xf32, #tpu.memory_space<vmem>>, vector<2x32xf32>,
    } else {
    }
    %c0_i32_3 = arith.constant 0 : i32
    %6 = arith.cmpi eq, %arg1, %c0_i32_3 : i32
    %7 = arith.extui %6 : i1 to i32
    %c0_i32_4 = arith.constant 0 : i32
    %8 = arith.cmpi ne, %7, %c0_i32_4 : i32
    scf.if %8 {
      %c0 = arith.constant 0 : index
      %c0_5 = arith.constant 0 : index
      %c0_6 = arith.constant 0 : index
      %9 = vector.load %arg2[%c0, %c0_5, %c0_6] : memref<2x32x256xf32, #tpu.memory_space<vmem>>, vector<2x32x256xf32>
      %c0_7 = arith.constant 0 : index
      %c0_8 = arith.constant 0 : index
      %10 = vector.load %arg8[%c0_7, %c0_8] : memref<2x32xf32, #tpu.memory_space<vmem>>, vector<2x32xf32>
      %cst = arith.constant dense<0.000000e+00> : vector<2x32xf32>
      %11 = vector.multi_reduction <add>, %9, %cst [2] : vector<2x32x256xf32> to vector<2x32xf32>
      %12 = arith.addf %10, %11 : vector<2x32xf32>
      %c0_9 = arith.constant 0 : index
      %c0_10 = arith.constant 0 : index
      %13 = vector.load %arg8[%c0_9, %c0_10] : memref<2x32xf32, #tpu.memory_space<vmem>>, vector<2x32xf32>
      tpu.vector_store %arg8[%c0_9, %c0_10], %12 {strides = array<i32>} : memref<2x32xf32, #tpu.memory_space<vmem>>, vector<2x32xf32>,
      %c0_11 = arith.constant 0 : index
      %c0_12 = arith.constant 0 : index
      %14 = vector.load %arg8[%c0_11, %c0_12] : memref<2x32xf32, #tpu.memory_space<vmem>>, vector<2x32xf32>
      %cst_13 = arith.constant 3.906250e-03 : f32
      %15 = vector.broadcast %cst_13 : f32 to vector<2x32xf32>
      %16 = arith.mulf %14, %15 : vector<2x32xf32>
      %c0_14 = arith.constant 0 : index
      %c0_15 = arith.constant 0 : index
      %17 = vector.load %arg3[%c0_14, %c0_15] : memref<32x2xf32, #tpu.memory_space<vmem>>, vector<32x2xf32>
      %cst_16 = arith.constant dense<0.000000e+00> : vector<2x2xf32>
      %18 = tpu.matmul %16, %17, %cst_16 {dimension_numbers = #tpu.dot_dimension_numbers<[1], [0], [0], [1], [0, 0, 1, 1], [], []>} : vector<2x32xf32>, vector<32x2xf32>, vector<2x2xf32> -> vector<2x2xf32>
      %c0_17 = arith.constant 0 : index
      %c0_18 = arith.constant 0 : index
      %19 = vector.load %arg4[%c0_17, %c0_18] : memref<1x2xf32, #tpu.memory_space<vmem>>, vector<1x2xf32>
      %20 = vector.broadcast %19 : vector<1x2xf32> to vector<2x2xf32>
      %21 = arith.addf %18, %20 : vector<2x2xf32>
      %cst_19 = arith.constant 0.000000e+00 : f32
      %22 = vector.broadcast %cst_19 : f32 to vector<2x2xf32>
      %23 = arith.maximumf %21, %22 : vector<2x2xf32>
      %c0_20 = arith.constant 0 : index
      %c0_21 = arith.constant 0 : index
      %24 = vector.load %arg5[%c0_20, %c0_21] : memref<2x32xf32, #tpu.memory_space<vmem>>, vector<2x32xf32>
      %cst_22 = arith.constant dense<0.000000e+00> : vector<2x32xf32>
      %25 = tpu.matmul %23, %24, %cst_22 {dimension_numbers = #tpu.dot_dimension_numbers<[1], [0], [0], [1], [0, 0, 1, 1], [], []>} : vector<2x2xf32>, vector<2x32xf32>, vector<2x32xf32> -> vector<2x32xf32>
      %c0_23 = arith.constant 0 : index
      %c0_24 = arith.constant 0 : index
      %26 = vector.load %arg6[%c0_23, %c0_24] : memref<1x32xf32, #tpu.memory_space<vmem>>, vector<1x32xf32>
      %27 = vector.broadcast %26 : vector<1x32xf32> to vector<2x32xf32>
      %28 = arith.addf %25, %27 : vector<2x32xf32>
      %c0_25 = arith.constant 0 : index
      %c0_26 = arith.constant 0 : index
      %29 = vector.load %arg7[%c0_25, %c0_26] : memref<2x32xf32, #tpu.memory_space<vmem>>, vector<2x32xf32>
      tpu.vector_store %arg7[%c0_25, %c0_26], %28 {strides = array<i32>} : memref<2x32xf32, #tpu.memory_space<vmem>>, vector<2x32xf32>,
    } else {
    }
    return
  }
  func.func @transform_0(%arg0: i32, %arg1: i32) -> (i32, i32, i32) {
    %c0_i32 = arith.constant 0 : i32
    %c0_i32_0 = arith.constant 0 : i32
    return %arg0, %c0_i32, %arg1 : i32, i32, i32
  }
  func.func @transform_1(%arg0: i32, %arg1: i32) -> (i32, i32) {
    %c0_i32 = arith.constant 0 : i32
    %c0_i32_0 = arith.constant 0 : i32
    %c0_i32_1 = arith.constant 0 : i32
    return %c0_i32, %c0_i32_0 : i32, i32
  }
  func.func @transform_2(%arg0: i32, %arg1: i32) -> (i32, i32) {
    %c0_i32 = arith.constant 0 : i32
    %c0_i32_0 = arith.constant 0 : i32
    %c0_i32_1 = arith.constant 0 : i32
    return %c0_i32, %c0_i32_0 : i32, i32
  }
  func.func @transform_3(%arg0: i32, %arg1: i32) -> (i32, i32) {
    %c0_i32 = arith.constant 0 : i32
    %c0_i32_0 = arith.constant 0 : i32
    %c0_i32_1 = arith.constant 0 : i32
    return %c0_i32, %c0_i32_0 : i32, i32
  }
  func.func @transform_4(%arg0: i32, %arg1: i32) -> (i32, i32) {
    %c0_i32 = arith.constant 0 : i32
    %c0_i32_0 = arith.constant 0 : i32
    %c0_i32_1 = arith.constant 0 : i32
    return %c0_i32, %c0_i32_0 : i32, i32
  }
  func.func @transform_5(%arg0: i32, %arg1: i32) -> (i32, i32) {
    %c0_i32 = arith.constant 0 : i32
    %c0_i32_0 = arith.constant 0 : i32
    return %arg0, %c0_i32 : i32, i32
  }
}

</mosaic_0001>

<bundles_post_ra>
// kernel: tpu_custom_call.1
= control target key start
LH: loop header
LB: loop body
LE: loop exit
PB: predicated region body
PF: predicated region fallthrough
CT: control target
= control target key end

     0   :  { %10 = vsyncpa [#allocation4], 0  ;;  %s417_s0 = inlined_call_operand.hbm [shape: f32[2,32,256], index: 0, kind: input, shape index: {}]   ;;  %s418_s1 = inlined_call_operand.vmem [shape: f32[32,2], index: 1, kind: input, shape index: {}]   ;;  %s419_s2 = inlined_call_operand.vmem [shape: f32[1,2], index: 2, kind: input, shape index: {}]   ;;  %s420_s3 = inlined_call_operand.vmem [shape: f32[2,32], index: 3, kind: input, shape index: {}]   ;;  %s421_s4 = inlined_call_operand.vmem [shape: f32[1,32], index: 4, kind: input, shape index: {}]   ;;  %s422_s5 = inlined_call_operand.hbm [shape: f32[2,32], index: 5, kind: output, shape index: {}]  }
   0x1   :  { %11 = vsyncpa [#allocation5], 0  ;;  %s16_s20 = sshll.u32 %s417_s0, 4  ;;  %s352_s21 = smov [#allocation3]   ;;  %s17_s20 = int_to_ptr.hbm [resolvable:$true] %s16_s20 }
   0x2   :  { %s18_s22 = sshll.u32 %s352_s21, 4  ;;  %s353_s23 = smov 256   ;;  %s19_s22 = int_to_ptr.vmem [resolvable:$true] %s18_s22 }
   0x3   :  { %s354_s24 = smov 16  }
   0x4   :  { %24 = dma.hbm_to_vmem [thread:$0]  %s17_s20, 2048, %s19_s22, [#allocation4], %s353_s23, %s353_s23, %s354_s24  }
   0x5   :  { %348 = dma.done.wait [#allocation4], 2048  }
   0x6   :  { %349 = vsyncadd [#allocation4], 4294965248  ;;  %v135_v0 = vld [vmem:[#allocation3 + $0x40] sm:$0xff]  ;;  %v136_v1 = vld [vmem:[#allocation3 + $0x48] sm:$0xff]  ;;  %vm41_vm0 = vcmask 254976   ;;  %v355_v24 = vmov 0.0   ;;  %v176_v30 = vlaneseq }
   0x7   :  { %v127_v2 = vld [vmem:[#allocation3] sm:$0xff]  ;;  %v156_v3 = vadd.f32 %v136_v1, %v135_v0  ;;  %v128_v4 = vld [vmem:[#allocation3 + $0x8] sm:$0xff]  ;;  %v137_v9 = vld [vmem:[#allocation3 + $0x50] sm:$0xff]  ;;  %42 = vst.msk [vmem:[#allocation2] sm:$0x3] %vm41_vm0, %v355_v24  ;;  %vm181_vm1 = vcmask 130112  }
   0x8   :  { %v131_v5 = vld [vmem:[#allocation3 + $0x20] sm:$0xff]  ;;  %v132_v6 = vld [vmem:[#allocation3 + $0x28] sm:$0xff]  ;;  %v144_v7 = vadd.f32 %v128_v4, %v127_v2  ;;  %v138_v10 = vld [vmem:[#allocation3 + $0x58] sm:$0xff]  ;;  %v177_v33 = vand.u32 127, %v176_v30  ;;  %vm185_vm2 = vcmask 195712   ;;  %vm189_vm3 = vcmask 261312  }
   0x9   :  { %v150_v8 = vadd.f32 %v132_v6, %v131_v5  ;;  %157 = vadd.xlane.f32.xlu1 %v156_v3  ;;  %v129_v11 = vld [vmem:[#allocation3 + $0x10] sm:$0xff]  ;;  %v130_v12 = vld [vmem:[#allocation3 + $0x18] sm:$0xff]  ;;  %v139_v13 = vld [vmem:[#allocation3 + $0x60] sm:$0xff]  ;;  %v159_v15 = vadd.f32 %v138_v10, %v137_v9  ;;  %vm198_vm4 = vcmask 1041409   ;;  %vm214_vm5 = vcmask 261120   ;;  %s356_s12 = smov [#allocation6]  }
   0xa   :  { %145 = vadd.xlane.f32.xlu0 %v144_v7  ;;  %v140_v14 = vld [vmem:[#allocation3 + $0x68] sm:$0xff]  ;;  %v147_v16 = vadd.f32 %v130_v12, %v129_v11  ;;  %v141_v18 = vld [vmem:[#allocation3 + $0x70] sm:$0xff]  ;;  %v142_v19 = vld [vmem:[#allocation3 + $0x78] sm:$0xff]  ;;  %v179_v34 = vadd.s32 4294967288, %v177_v33  ;;  %v183_v39 = vadd.s32 4294967280, %v177_v33  ;;  %v187_v42 = vadd.s32 4294967272, %v177_v33 }
   0xb   :  { %151 = vadd.xlane.f32.xlu2 %v150_v8  ;;  %v162_v17 = vadd.f32 %v140_v14, %v139_v13  ;;  %v133_v20 = vld [vmem:[#allocation3 + $0x30] sm:$0xff]  ;;  %v134_v21 = vld [vmem:[#allocation3 + $0x38] sm:$0xff]  ;;  %v165_v22 = vadd.f32 %v142_v19, %v141_v18  ;;  %v207_v27 = vld [vmem:[%s418_s1 + $0x8] sm:$0xff]  ;;  %vm248_vm6 = vcmask 1041408   ;;  %vm244_vm7 = vcmask 15360   ;;  %s278_s13 = sshll.u32 %s356_s12, 4  ;;  %s279_s13 = int_to_ptr.vmem [resolvable:$true] %s278_s13 }
   0xc   :  { %v153_v23 = vadd.f32 %v134_v21, %v133_v20  ;;  %v209_v25 = vld [vmem:[%s418_s1 + $0x18] sm:$0xff]  ;;  %v208_v26 = vld [vmem:[%s418_s1 + $0x10] sm:$0xff]  ;;  %v206_v28 = vld [vmem:[%s418_s1] sm:$0xff] }
   0xd   :  { %230 = vmatpush.msra.mxu0 %v209_v25  ;;  %v239_v61 = vld [vmem:[%s420_s3] sm:$0x3]  ;;  %s280_s3 = sshll.u32 %s422_s5, 4  ;;  %s281_s3 = int_to_ptr.hbm [resolvable:$true] %s280_s3 }
   0xe   :  { %v143_v55 = vld [vmem:[#allocation2] sm:$0x3]  ;;  %291 = vmatpush.msk.msra.mxu1 %vm248_vm6, %v239_v61 }
   0xf   :  { %231 = vmatpush.msra.mxu0 %v208_v26  ;;  %v298_v62 = vld [vmem:[%s419_s2] ss:$0 sm:$0xff] }
  0x10   :  { %v299_v2 = vld [vmem:[%s421_s4] ss:$0 sm:$0xff] }
  0x11   :  { %160 = vadd.xlane.f32.xlu1 %v159_v15  ;;  %232 = vmatpush.msra.mxu0 %v207_v27 }
  0x12   :  { %148 = vadd.xlane.f32.xlu0 %v147_v16 }
  0x13   :  { %163 = vadd.xlane.f32.xlu2 %v162_v17  ;;  %233 = vmatpush.msra.mxu0 %v206_v28 }
  0x19   :  { %166 = vadd.xlane.f32.xlu1 %v165_v22 }
  0x1a   :  { %154 = vadd.xlane.f32.xlu0 %v153_v23 }
  0x7c   :  { %v158_v29 = vpop.xlane.xlu1 %157 }
  0x7d   :  { %v146_v31 = vpop.xlane.xlu0 %145  ;;  %v191_v41 = vperm.slane %v158_v29, %v177_v33 }
  0x7e   :  { %v152_v32 = vpop.xlane.xlu2 %151  ;;  %v178_v43 = vperm.slane %v146_v31, %v177_v33 }
  0x7f   :  { %v184_v48 = vperm.slane %v152_v32, %v183_v39 }
  0x84   :  { %v161_v35 = vpop.xlane.xlu1 %160 }
  0x85   :  { %v149_v36 = vpop.xlane.xlu0 %148  ;;  %v192_v37 = vperm.slane %v161_v35, %v179_v34 }
  0x86   :  { %v164_v38 = vpop.xlane.xlu2 %163  ;;  %v180_v40 = vperm.slane %v149_v36, %v179_v34 }
  0x87   :  { %v194_v44 = vperm.slane %v164_v38, %v183_v39  ;;  %v193_v45 = vsel %vm181_vm1, %v192_v37, %v191_v41 }
  0x88   :  { %v182_v46 = vsel %vm181_vm1, %v180_v40, %v178_v43 }
  0x89   :  { %v195_v51 = vsel %vm185_vm2, %v194_v44, %v193_v45  ;;  %v186_v54 = vsel %vm185_vm2, %v184_v48, %v182_v46 }
  0x8c   :  { %v167_v47 = vpop.xlane.xlu1 %166 }
  0x8d   :  { %v196_v49 = vperm.slane %v167_v47, %v187_v42  ;;  %v155_v50 = vpop.xlane.xlu0 %154 }
  0x8e   :  { %v188_v52 = vperm.slane %v155_v50, %v187_v42 }
  0x8f   :  { %v197_v53 = vsel %vm189_vm3, %v196_v49, %v195_v51 }
  0x90   :  { %v190_v56 = vsel %vm189_vm3, %v188_v52, %v186_v54 }
  0x91   :  { %v199_v57 = vsel %vm198_vm4, %v197_v53, %v190_v56 }
  0x92   :  { %v201_v58 = vadd.f32 %v199_v57, %v143_v55 }
  0x94   :  { %203 = vst.msk [vmem:[#allocation2] sm:$0x3] %vm41_vm0, %v201_v58 }
  0x9b   :  { %v204_v59 = vld [vmem:[#allocation2] sm:$0x3] }
  0x9c   :  { %v205_v60 = vmul.f32 0.00390625, %v204_v59 }
  0x9e   :  { %290 = vmatmul.msk.f32.vlgmr.msra.gmra.mxu0 %vm214_vm5, %v205_v60 }
 0x11b   :  { %v235_v63 = vpop.f32.mrf.mxu0 }
 0x11c   :  { %v236_v0 = vadd.f32 %v298_v62, %v235_v63 }
 0x11e   :  { %v238_v1 = vmax.f32 %v236_v0, 0.0 }
 0x120   :  { %292 = vmatmul.msk.f32.vlgmr.msra.gmra.mxu1 %vm244_vm7, %v238_v1 }
 0x19d   :  { %v269_v3 = vpop.f32.mrf.mxu1 }
 0x19e   :  { %v270_v4 = vadd.f32 %v299_v2, %v269_v3 }
 0x1a0   :  { %272 = vst.msk [vmem:[#allocation6] sm:$0x3] %vm41_vm0, %v270_v4 }
 0x1a1   :  { %283 = dma.vmem_to_hbm [thread:$0]  %s279_s13, 32, %s281_s3, [#allocation5]  }
 0x1a2   :  { %350 = dma.done.wait [#allocation5], 32  }
 0x1a3   :  { %351 = vsyncadd [#allocation5], 4294967264 }
 0x1a4   :  { %288 = vsyncpa [#allocation4], 1 }
 0x1a5   :  { %289 = vsyncpa [#allocation5], 1 }

</bundles_post_ra>
